<compile_context>
chip_gen: v7x
topology: tpu7x:2x2x1
jax: 0.10.0
libtpu: 0.0.40
codegen_flags: <defaults>
</compile_context>

<pallas_src>
import jax
import jax.numpy as jnp
from jax.experimental import pallas as pl
from jax.experimental.pallas import tpu as pltpu

_LANES = 128
_BLOCK_ROWS = 2048  # 2048 x 128 f32 = 1 MiB input block per grid step


def _elementwise_kernel(x_ref, add_ref, sub_ref, mul_ref, div_ref, gt_ref, lt_ref):
    x = x_ref[...]
    add_ref[...] = x + 2.0
    sub_ref[...] = x - 2.0
    mul_ref[...] = x * 2.0
    div_ref[...] = x * 0.5          # exact for f32 (power-of-two scale)
    gt_ref[...] = (x > 1.0).astype(jnp.int8)
    lt_ref[...] = (x < 5.0).astype(jnp.int8)


def pt_module_forward(x, block_rows: int = _BLOCK_ROWS):
    """Equivalent of PtModule.forward for a float32 array of any shape."""
    orig_shape = x.shape
    n = x.size

    # Flatten to a lane-dense 2-D slab, padding the tail to a lane multiple.
    flat = x.reshape(-1)
    pad = (-n) % _LANES
    if pad:
        flat = jnp.pad(flat, (0, pad))
    rows = flat.size // _LANES
    x2d = flat.reshape(rows, _LANES)

    # Block over rows. If the array fits in one block, use the full extent
    # (satisfies the (8,128) rule via "block dim equals full array dim").
    br = block_rows if rows > block_rows else rows
    grid = (pl.cdiv(rows, br),)

    f32_spec = pl.BlockSpec((br, _LANES), lambda i: (i, 0))
    i8_spec = pl.BlockSpec((br, _LANES), lambda i: (i, 0))

    out_shapes = (
        jax.ShapeDtypeStruct((rows, _LANES), x.dtype),   # add
        jax.ShapeDtypeStruct((rows, _LANES), x.dtype),   # sub
        jax.ShapeDtypeStruct((rows, _LANES), x.dtype),   # mul
        jax.ShapeDtypeStruct((rows, _LANES), x.dtype),   # div
        jax.ShapeDtypeStruct((rows, _LANES), jnp.int8),  # gt (-> bool outside)
        jax.ShapeDtypeStruct((rows, _LANES), jnp.int8),  # lt (-> bool outside)
    )

    outs = pl.pallas_call(
        _elementwise_kernel,
        out_shape=out_shapes,
        grid=grid,
        in_specs=[f32_spec],
        out_specs=(f32_spec, f32_spec, f32_spec, f32_spec, i8_spec, i8_spec),
        compiler_params=pltpu.CompilerParams(
            dimension_semantics=("parallel",),
            vmem_limit_bytes=48 * 1024 * 1024,
        ),
    )(x2d)

    def _restore(arr, to_bool=False):
        out = arr.reshape(-1)
        if pad:
            out = out[:n]
        out = out.reshape(orig_shape)
        return out.astype(jnp.bool_) if to_bool else out

    add_r, sub_r, mul_r, div_r, gt_r, lt_r = outs
    return (
        _restore(add_r),
        _restore(sub_r),
        _restore(mul_r),
        _restore(div_r),
        _restore(gt_r, to_bool=True),
        _restore(lt_r, to_bool=True),
    )


if __name__ == "__main__":
    key = jax.random.PRNGKey(0)

    # Small NCHW input consistent with a generic tensor forward.
    x = jax.random.normal(key, (2, 4, 16, 16), dtype=jnp.float32) * 3.0

    def check(inp):
        outs = jax.block_until_ready(pt_module_forward(inp))
        ref = (inp + 2, inp - 2, inp * 2, inp / 2, inp > 1, inp < 5)
        for got, exp in zip(outs, ref):
            assert got.shape == exp.shape, (got.shape, exp.shape)
            assert got.dtype == exp.dtype, (got.dtype, exp.dtype)
            if got.dtype == jnp.bool_:
                assert bool(jnp.all(got == exp))
            else:
                assert bool(jnp.allclose(got, exp, atol=1e-6))

    # Main test shape (size is a multiple of 128).
    check(x)

    # Ragged shape to exercise the padding path (size NOT a multiple of 128).
    key2 = jax.random.PRNGKey(1)
    x_odd = jax.random.normal(key2, (3, 5, 7, 11), dtype=jnp.float32) * 3.0
    check(x_odd)

    print("KERNEL_OK")
</pallas_src>

<mosaic_0001>
module attributes {stable_mosaic.version = 11 : i64} {
  func.func @_elementwise_kernel(%arg0: i32, %arg1: memref<16x128xf32, #tpu.memory_space<vmem>>, %arg2: memref<16x128xf32, #tpu.memory_space<vmem>>, %arg3: memref<16x128xf32, #tpu.memory_space<vmem>>, %arg4: memref<16x128xf32, #tpu.memory_space<vmem>>, %arg5: memref<16x128xf32, #tpu.memory_space<vmem>>, %arg6: memref<16x128xi8, #tpu.memory_space<vmem>>, %arg7: memref<16x128xi8, #tpu.memory_space<vmem>>) attributes {dimension_semantics = [#tpu.dimension_semantics<parallel>], iteration_bounds = array<i64: 1>, scalar_prefetch = 0 : i64, scratch_operands = 0 : i64, tpu.core_type = #tpu.core_type<tc>, window_params = [{transform_indices = @transform_0, window_bounds = array<i64: 16, 128>}, {transform_indices = @transform_1, window_bounds = array<i64: 16, 128>}, {transform_indices = @transform_2, window_bounds = array<i64: 16, 128>}, {transform_indices = @transform_3, window_bounds = array<i64: 16, 128>}, {transform_indices = @transform_4, window_bounds = array<i64: 16, 128>}, {transform_indices = @transform_5, window_bounds = array<i64: 16, 128>}, {transform_indices = @transform_6, window_bounds = array<i64: 16, 128>}]} {
    %c0 = arith.constant 0 : index
    %c0_0 = arith.constant 0 : index
    %0 = vector.load %arg1[%c0, %c0_0] : memref<16x128xf32, #tpu.memory_space<vmem>>, vector<16x128xf32>
    %cst = arith.constant 2.000000e+00 : f32
    %1 = vector.broadcast %cst : f32 to vector<16x128xf32>
    %2 = arith.addf %0, %1 : vector<16x128xf32>
    %c0_1 = arith.constant 0 : index
    %c0_2 = arith.constant 0 : index
    %3 = vector.load %arg2[%c0_1, %c0_2] : memref<16x128xf32, #tpu.memory_space<vmem>>, vector<16x128xf32>
    tpu.vector_store %arg2[%c0_1, %c0_2], %2 {strides = array<i32>} : memref<16x128xf32, #tpu.memory_space<vmem>>, vector<16x128xf32>,
    %cst_3 = arith.constant 2.000000e+00 : f32
    %4 = vector.broadcast %cst_3 : f32 to vector<16x128xf32>
    %5 = arith.subf %0, %4 : vector<16x128xf32>
    %c0_4 = arith.constant 0 : index
    %c0_5 = arith.constant 0 : index
    %6 = vector.load %arg3[%c0_4, %c0_5] : memref<16x128xf32, #tpu.memory_space<vmem>>, vector<16x128xf32>
    tpu.vector_store %arg3[%c0_4, %c0_5], %5 {strides = array<i32>} : memref<16x128xf32, #tpu.memory_space<vmem>>, vector<16x128xf32>,
    %cst_6 = arith.constant 2.000000e+00 : f32
    %7 = vector.broadcast %cst_6 : f32 to vector<16x128xf32>
    %8 = arith.mulf %0, %7 : vector<16x128xf32>
    %c0_7 = arith.constant 0 : index
    %c0_8 = arith.constant 0 : index
    %9 = vector.load %arg4[%c0_7, %c0_8] : memref<16x128xf32, #tpu.memory_space<vmem>>, vector<16x128xf32>
    tpu.vector_store %arg4[%c0_7, %c0_8], %8 {strides = array<i32>} : memref<16x128xf32, #tpu.memory_space<vmem>>, vector<16x128xf32>,
    %cst_9 = arith.constant 5.000000e-01 : f32
    %10 = vector.broadcast %cst_9 : f32 to vector<16x128xf32>
    %11 = arith.mulf %0, %10 : vector<16x128xf32>
    %c0_10 = arith.constant 0 : index
    %c0_11 = arith.constant 0 : index
    %12 = vector.load %arg5[%c0_10, %c0_11] : memref<16x128xf32, #tpu.memory_space<vmem>>, vector<16x128xf32>
    tpu.vector_store %arg5[%c0_10, %c0_11], %11 {strides = array<i32>} : memref<16x128xf32, #tpu.memory_space<vmem>>, vector<16x128xf32>,
    %cst_12 = arith.constant 1.000000e+00 : f32
    %13 = vector.broadcast %cst_12 : f32 to vector<16x128xf32>
    %14 = arith.cmpf ogt, %0, %13 : vector<16x128xf32>
    %15 = arith.extui %14 : vector<16x128xi1> to vector<16x128xi8>
    %c0_13 = arith.constant 0 : index
    %c0_14 = arith.constant 0 : index
    %16 = vector.load %arg6[%c0_13, %c0_14] : memref<16x128xi8, #tpu.memory_space<vmem>>, vector<16x128xi8>
    tpu.vector_store %arg6[%c0_13, %c0_14], %15 {strides = array<i32>} : memref<16x128xi8, #tpu.memory_space<vmem>>, vector<16x128xi8>,
    %cst_15 = arith.constant 5.000000e+00 : f32
    %17 = vector.broadcast %cst_15 : f32 to vector<16x128xf32>
    %18 = arith.cmpf olt, %0, %17 : vector<16x128xf32>
    %19 = arith.extui %18 : vector<16x128xi1> to vector<16x128xi8>
    %c0_16 = arith.constant 0 : index
    %c0_17 = arith.constant 0 : index
    %20 = vector.load %arg7[%c0_16, %c0_17] : memref<16x128xi8, #tpu.memory_space<vmem>>, vector<16x128xi8>
    tpu.vector_store %arg7[%c0_16, %c0_17], %19 {strides = array<i32>} : memref<16x128xi8, #tpu.memory_space<vmem>>, vector<16x128xi8>,
    return
  }
  func.func @transform_0(%arg0: i32) -> (i32, i32) {
    %c0_i32 = arith.constant 0 : i32
    %c0_i32_0 = arith.constant 0 : i32
    return %arg0, %c0_i32 : i32, i32
  }
  func.func @transform_1(%arg0: i32) -> (i32, i32) {
    %c0_i32 = arith.constant 0 : i32
    %c0_i32_0 = arith.constant 0 : i32
    return %arg0, %c0_i32 : i32, i32
  }
  func.func @transform_2(%arg0: i32) -> (i32, i32) {
    %c0_i32 = arith.constant 0 : i32
    %c0_i32_0 = arith.constant 0 : i32
    return %arg0, %c0_i32 : i32, i32
  }
  func.func @transform_3(%arg0: i32) -> (i32, i32) {
    %c0_i32 = arith.constant 0 : i32
    %c0_i32_0 = arith.constant 0 : i32
    return %arg0, %c0_i32 : i32, i32
  }
  func.func @transform_4(%arg0: i32) -> (i32, i32) {
    %c0_i32 = arith.constant 0 : i32
    %c0_i32_0 = arith.constant 0 : i32
    return %arg0, %c0_i32 : i32, i32
  }
  func.func @transform_5(%arg0: i32) -> (i32, i32) {
    %c0_i32 = arith.constant 0 : i32
    %c0_i32_0 = arith.constant 0 : i32
    return %arg0, %c0_i32 : i32, i32
  }
  func.func @transform_6(%arg0: i32) -> (i32, i32) {
    %c0_i32 = arith.constant 0 : i32
    %c0_i32_0 = arith.constant 0 : i32
    return %arg0, %c0_i32 : i32, i32
  }
}

</mosaic_0001>

<bundles_post_ra>
// kernel: tpu_custom_call.1
= control target key start
LH: loop header
LB: loop body
LE: loop exit
PB: predicated region body
PF: predicated region fallthrough
CT: control target
= control target key end

     0   :  { %12 = vsyncpa [#allocation3], 0  ;;  %s548_s0 = inlined_call_operand.hbm [shape: f32[16,128], index: 0, kind: input, shape index: {}]   ;;  %s549_s1 = inlined_call_operand.hbm [shape: f32[16,128], index: 1, kind: output, shape index: {0}]   ;;  %s550_s2 = inlined_call_operand.hbm [shape: f32[16,128], index: 2, kind: output, shape index: {1}]   ;;  %s551_s3 = inlined_call_operand.hbm [shape: f32[16,128], index: 3, kind: output, shape index: {2}]   ;;  %s552_s4 = inlined_call_operand.hbm [shape: f32[16,128], index: 4, kind: output, shape index: {3}]   ;;  %s553_s5 = inlined_call_operand.hbm [shape: s8[16,128], index: 5, kind: output, shape index: {4}]   ;;  %s554_s6 = inlined_call_operand.hbm [shape: s8[16,128], index: 6, kind: output, shape index: {5}]  }
   0x1   :  { %13 = vsyncpa [#allocation4], 0 }
   0x2   :  { %14 = vsyncpa [#allocation7], 0 }
   0x3   :  { %15 = vsyncpa [#allocation10], 0 }
   0x4   :  { %16 = vsyncpa [#allocation13], 0  ;;  %s351_s21 = smov [#allocation2]   ;;  %s187_s25 = scalar_lea.hbm %s548_s0, 256 }
   0x5   :  { %s22_s22 = sshll.u32 %s351_s21, 4  ;;  %p188_p0 = scmp.ne.s32.totalorder %s548_s0, %s187_s25  ;;  %s23_s22 = int_to_ptr.vmem [resolvable:$true] %s22_s22 }
   0x6   :  { %p191_p1 = scmp.lt.u32.totalorder %s187_s25, %s548_s0 }
   0x8   :  { %p193_p2 = pnand %p191_p1, %p188_p0 }
   0xa   :  { %196 = shalt.err (!%p193_p2)
}
   0xb   :  { %s197_s30 = scalar_lea.vmem %s23_s22, 256  ;;  %p202_p4 = scmp.lt.s32.totalorder %s23_s22, %s23_s22 }
   0xc   :  { %p198_p3 = scmp.ne.s32.totalorder %s23_s22, %s197_s30  ;;  %p203_p5 = scmp.lt.s32.totalorder %s197_s30, %s197_s30 }
   0xe   :  { %p204_p6 = por %p203_p5, %p202_p4 }
  0x10   :  { %p205_p7 = pnand %p204_p6, %p198_p3 }
  0x12   :  { %208 = shalt.err (!%p205_p7)
}
  0x13   :  { %s352_s7 = smov 128   ;;  %s353_s8 = smov 8  }
  0x14   :  { %28 = dma.hbm_to_vmem [thread:$0]  %s548_s0, 256, %s23_s22, [#allocation3], %s352_s7, %s352_s7, %s353_s8  }
  0x15   :  { %341 = dma.done.wait [#allocation3], 256  }
  0x16   :  { %342 = vsyncadd [#allocation3], 4294967040  ;;  %s354_s11 = smov [#allocation6]   ;;  %s355_s13 = smov [#allocation9]   ;;  %v34_v0 = vld [vmem:[#allocation2] sm:$0xff]  ;;  %v35_v1 = vld [vmem:[#allocation2 + $0x8] sm:$0xff] }
  0x17   :  { %s95_s12 = sshll.u32 %s354_s11, 4  ;;  %s119_s14 = sshll.u32 %s355_s13, 4  ;;  %v173_v2 = vadd.f32 -2.0, %v34_v0  ;;  %v174_v3 = vadd.f32 -2.0, %v35_v1  ;;  %v48_v4 = vmul.f32 0.5, %v34_v0  ;;  %v49_v5 = vmul.f32 0.5, %v35_v1  ;;  %s413_s12 = int_to_ptr.vmem [resolvable:$true] %s95_s12  ;;  %s415_s14 = int_to_ptr.vmem [resolvable:$true] %s119_s14 }
  0x18   :  { %s356_s15 = smov [#allocation5]   ;;  %s357_s17 = smov [#allocation8]   ;;  %v36_v6 = vadd.f32 2.0, %v34_v0  ;;  %v37_v7 = vadd.f32 2.0, %v35_v1  ;;  %v44_v8 = vmul.f32 2.0, %v34_v0  ;;  %v45_v9 = vmul.f32 2.0, %v35_v1 }
  0x19   :  { %s83_s16 = sshll.u32 %s356_s15, 4  ;;  %s107_s18 = sshll.u32 %s357_s17, 4  ;;  %42 = vst [vmem:[#allocation6] sm:$0xff] %v173_v2  ;;  %43 = vst [vmem:[#allocation6 + $0x8] sm:$0xff] %v174_v3  ;;  %vm52_vm0 = vcmp.gt.f32.partialorder %v34_v0, 1.0  ;;  %vm53_vm1 = vcmp.gt.f32.partialorder %v35_v1, 1.0  ;;  %s417_s16 = int_to_ptr.vmem [resolvable:$true] %s83_s16  ;;  %s419_s18 = int_to_ptr.vmem [resolvable:$true] %s107_s18 }
  0x1a   :  { %50 = vst [vmem:[#allocation9] sm:$0xff] %v48_v4  ;;  %51 = vst [vmem:[#allocation9 + $0x8] sm:$0xff] %v49_v5  ;;  %vm65_vm2 = vcmp.lt.f32.partialorder %v34_v0, 5.0  ;;  %vm66_vm3 = vcmp.lt.f32.partialorder %v35_v1, 5.0  ;;  %s209_s0 = scalar_lea.vmem %s413_s12, 256  ;;  %p214_p9 = scmp.lt.s32.totalorder %s413_s12, %s413_s12 }
  0x1b   :  { %38 = vst [vmem:[#allocation5] sm:$0xff] %v36_v6  ;;  %39 = vst [vmem:[#allocation5 + $0x8] sm:$0xff] %v37_v7  ;;  %p210_p8 = scmp.ne.s32.totalorder %s413_s12, %s209_s0  ;;  %p215_p10 = scmp.lt.s32.totalorder %s209_s0, %s209_s0 }
  0x1c   :  { %46 = vst [vmem:[#allocation8] sm:$0xff] %v44_v8  ;;  %47 = vst [vmem:[#allocation8 + $0x8] sm:$0xff] %v45_v9 }
  0x1d   :  { %vm421_vm4 = vmpackc.low %vm53_vm1, %vm52_vm0  ;;  %p216_p11 = por %p215_p10, %p214_p9 }
  0x1f   :  { %p217_p12 = pnand %p216_p11, %p210_p8 }
  0x21   :  { %220 = shalt.err (!%p217_p12)
}
  0x22   :  { %s221_s21 = scalar_lea.hbm %s550_s2, 256 }
  0x23   :  { %p222_p13 = scmp.ne.s32.totalorder %s550_s2, %s221_s21  ;;  %p225_p0 = scmp.lt.u32.totalorder %s221_s21, %s550_s2 }
  0x25   :  { %p227_p1 = pnand %p225_p0, %p222_p13 }
  0x27   :  { %230 = shalt.err (!%p227_p1)
}
  0x28   :  { %101 = dma.vmem_to_hbm [thread:$0]  %s413_s12, 256, %s550_s2, [#allocation7], %s352_s7, %s352_s7, %s353_s8   ;;  %vm55_vm5 = vmpackc.even %vm421_vm4, %vm421_vm4 }
  0x29   :  { %s231_s28 = scalar_lea.vmem %s415_s14, 256  ;;  %p236_p3 = scmp.lt.s32.totalorder %s415_s14, %s415_s14 }
  0x2a   :  { %p232_p2 = scmp.ne.s32.totalorder %s415_s14, %s231_s28  ;;  %p237_p4 = scmp.lt.s32.totalorder %s231_s28, %s231_s28 }
  0x2c   :  { %p238_p5 = por %p237_p4, %p236_p3 }
  0x2e   :  { %p239_p6 = pnand %p238_p5, %p232_p2 }
  0x30   :  { %242 = shalt.err (!%p239_p6)
}
  0x31   :  { %s243_s9 = scalar_lea.hbm %s552_s4, 256 }
  0x32   :  { %p244_p7 = scmp.ne.s32.totalorder %s552_s4, %s243_s9  ;;  %p247_p8 = scmp.lt.u32.totalorder %s243_s9, %s552_s4 }
  0x34   :  { %p249_p9 = pnand %p247_p8, %p244_p7 }
  0x36   :  { %252 = shalt.err (!%p249_p9)
}
  0x37   :  { %125 = dma.vmem_to_hbm [thread:$0]  %s415_s14, 256, %s552_s4, [#allocation10], %s352_s7, %s352_s7, %s353_s8   ;;  %v358_v11 = vmov 0   ;;  %vm470_vm6 = vmpackc.low %vm66_vm3, %vm65_vm2 }
  0x38   :  { %v56_v12 = vsel %vm55_vm5, 16843009, %v358_v11  ;;  %s253_s17 = scalar_lea.vmem %s417_s16, 256  ;;  %p258_p11 = scmp.lt.s32.totalorder %s417_s16, %s417_s16 }
  0x39   :  { %p254_p10 = scmp.ne.s32.totalorder %s417_s16, %s253_s17  ;;  %p259_p12 = scmp.lt.s32.totalorder %s253_s17, %s253_s17 }
  0x3b   :  { %p260_p13 = por %p259_p12, %p258_p11 }
  0x3d   :  { %p261_p0 = pnand %p260_p13, %p254_p10 }
  0x3f   :  { %264 = shalt.err (!%p261_p0)
}
  0x40   :  { %s265_s4 = scalar_lea.hbm %s549_s1, 256 }
  0x41   :  { %p266_p1 = scmp.ne.s32.totalorder %s549_s1, %s265_s4  ;;  %p269_p2 = scmp.lt.u32.totalorder %s265_s4, %s549_s1 }
  0x43   :  { %p271_p3 = pnand %p269_p2, %p266_p1 }
  0x45   :  { %274 = shalt.err (!%p271_p3)
}
  0x46   :  { %89 = dma.vmem_to_hbm [thread:$0]  %s417_s16, 256, %s549_s1, [#allocation4], %s352_s7, %s352_s7, %s353_s8   ;;  %v57_v14 = vunpack.c.0.s8 %v56_v12  ;;  %v58_v15 = vunpack.c.1.s8 %v56_v12  ;;  %vm68_vm7 = vmpackc.even %vm470_vm6, %vm470_vm6 }
  0x47   :  { %s275_s25 = scalar_lea.vmem %s419_s18, 256  ;;  %p280_p5 = scmp.lt.s32.totalorder %s419_s18, %s419_s18 }
  0x48   :  { %p276_p4 = scmp.ne.s32.totalorder %s419_s18, %s275_s25  ;;  %p281_p6 = scmp.lt.s32.totalorder %s275_s25, %s275_s25 }
  0x4a   :  { %p282_p7 = por %p281_p6, %p280_p5 }
  0x4c   :  { %p283_p8 = pnand %p282_p7, %p276_p4 }
  0x4e   :  { %286 = shalt.err (!%p283_p8)
}
  0x4f   :  { %s287_s28 = scalar_lea.hbm %s551_s3, 256 }
  0x50   :  { %p288_p9 = scmp.ne.s32.totalorder %s551_s3, %s287_s28  ;;  %p291_p10 = scmp.lt.u32.totalorder %s287_s28, %s551_s3 }
  0x52   :  { %p293_p11 = pnand %p291_p10, %p288_p9 }
  0x54   :  { %296 = shalt.err (!%p293_p11)
}
  0x55   :  { %113 = dma.vmem_to_hbm [thread:$0]  %s419_s18, 256, %s551_s3, [#allocation7], %s352_s7, %s352_s7, %s353_s8   ;;  %v69_v16 = vsel %vm68_vm7, 16843009, %v358_v11  ;;  %v59_v17 = vpack.c.b16 %v57_v14, %v57_v14  ;;  %v61_v18 = vpack.c.b16 %v58_v15, %v58_v15 }
  0x56   :  { %s359_s11 = smov [#allocation11]   ;;  %v70_v19 = vunpack.c.0.s8 %v69_v16  ;;  %v71_v20 = vunpack.c.1.s8 %v69_v16  ;;  %s360_s12 = smov [#allocation12]  }
  0x57   :  { %s131_s2 = sshll.u32 %s359_s11, 4  ;;  %s143_s13 = sshll.u32 %s360_s12, 4  ;;  %v60_v21 = vpack.c.b8 %v59_v17, %v59_v17  ;;  %v62_v22 = vpack.c.b8 %v61_v18, %v61_v18  ;;  %s132_s2 = int_to_ptr.vmem [resolvable:$true] %s131_s2  ;;  %s517_s13 = int_to_ptr.vmem [resolvable:$true] %s143_s13 }
  0x58   :  { %v72_v23 = vpack.c.b16 %v70_v19, %v70_v19  ;;  %v74_v24 = vpack.c.b16 %v71_v20, %v71_v20  ;;  %s297_s3 = scalar_lea.vmem %s132_s2, 64  ;;  %p302_p13 = scmp.lt.s32.totalorder %s132_s2, %s132_s2 }
  0x59   :  { %63 = vst [vmem:[#allocation11] sm:$0x3] %v60_v21  ;;  %64 = vst [vmem:[#allocation11 + $0x2] sm:$0x3] %v62_v22  ;;  %p298_p12 = scmp.ne.s32.totalorder %s132_s2, %s297_s3  ;;  %p303_p0 = scmp.lt.s32.totalorder %s297_s3, %s297_s3 }
  0x5a   :  { %v73_v25 = vpack.c.b8 %v72_v23, %v72_v23  ;;  %v75_v26 = vpack.c.b8 %v74_v24, %v74_v24 }
  0x5b   :  { %p304_p1 = por %p303_p0, %p302_p13 }
  0x5d   :  { %p305_p2 = pnand %p304_p1, %p298_p12 }
  0x5f   :  { %308 = shalt.err (!%p305_p2)
}
  0x60   :  { %s309_s18 = scalar_lea.hbm %s553_s5, 64 }
  0x61   :  { %p310_p3 = scmp.ne.s32.totalorder %s553_s5, %s309_s18  ;;  %p313_p4 = scmp.lt.u32.totalorder %s309_s18, %s553_s5 }
  0x63   :  { %p315_p5 = pnand %p313_p4, %p310_p3 }
  0x65   :  { %318 = shalt.err (!%p315_p5)
}
  0x66   :  { %s361_s4 = smov 32   ;;  %s362_s14 = smov 2   ;;  %76 = vst [vmem:[#allocation12] sm:$0x3] %v73_v25  ;;  %77 = vst [vmem:[#allocation12 + $0x2] sm:$0x3] %v75_v26 }
  0x67   :  { %137 = dma.vmem_to_hbm [thread:$0]  %s132_s2, 64, %s553_s5, [#allocation10], %s361_s4, %s361_s4, %s362_s14  }
  0x68   :  { %s319_s22 = scalar_lea.vmem %s517_s13, 64  ;;  %p324_p7 = scmp.lt.s32.totalorder %s517_s13, %s517_s13 }
  0x69   :  { %p320_p6 = scmp.ne.s32.totalorder %s517_s13, %s319_s22  ;;  %p325_p8 = scmp.lt.s32.totalorder %s319_s22, %s319_s22 }
  0x6b   :  { %p326_p9 = por %p325_p8, %p324_p7 }
  0x6d   :  { %p327_p10 = pnand %p326_p9, %p320_p6 }
  0x6f   :  { %330 = shalt.err (!%p327_p10)
}
  0x70   :  { %s331_s25 = scalar_lea.hbm %s554_s6, 64 }
  0x71   :  { %p332_p11 = scmp.ne.s32.totalorder %s554_s6, %s331_s25  ;;  %p335_p12 = scmp.lt.u32.totalorder %s331_s25, %s554_s6 }
  0x73   :  { %p337_p13 = pnand %p335_p12, %p332_p11 }
  0x75   :  { %340 = shalt.err (!%p337_p13)
}
  0x76   :  { %149 = dma.vmem_to_hbm [thread:$0]  %s517_s13, 64, %s554_s6, [#allocation13], %s361_s4, %s361_s4, %s362_s14  }
  0x77   :  { %343 = dma.done.wait [#allocation4], 256  }
  0x78   :  { %344 = vsyncadd [#allocation4], 4294967040 }
  0x79   :  { %345 = dma.done.wait [#allocation7], 512  }
  0x7a   :  { %346 = vsyncadd [#allocation7], 4294966784 }
  0x7b   :  { %347 = dma.done.wait [#allocation10], 320  }
  0x7c   :  { %348 = vsyncadd [#allocation10], 4294966976 }
  0x7d   :  { %349 = dma.done.wait [#allocation13], 64  }
  0x7e   :  { %350 = vsyncadd [#allocation13], 4294967232 }
  0x7f   :  { %168 = vsyncpa [#allocation3], 1 }
  0x80   :  { %169 = vsyncpa [#allocation4], 1 }
  0x81   :  { %170 = vsyncpa [#allocation7], 1 }
  0x82   :  { %171 = vsyncpa [#allocation10], 1 }
  0x83   :  { %172 = vsyncpa [#allocation13], 1 }

</bundles_post_ra>
